<compile_context>
chip_gen: v6e
topology: v6e:2x2x1
jax: 0.10.0
libtpu: 0.0.40
codegen_flags: <defaults>
</compile_context>

<pallas_src>
import numpy as np
import jax
import jax.numpy as jnp
from jax import lax
from jax.experimental import pallas as pl
from jax.experimental.pallas import tpu as pltpu


# ----------------------------- Pallas kernel --------------------------------

def _make_kernel(kh_out, activation, has_residual):
    """kh_out: number of output rows belonging to parity group 0 (static)."""
    neg_slope = 0.01  # F.leaky_relu default

    def kernel(x_ref, w_ref, b_ref, *rest):
        if has_residual:
            r_ref, o_ref = rest
        else:
            (o_ref,) = rest

        # x_ref: (2, Kh, TN) f32 — parity-grouped im2col features, pixels on lanes.
        x0 = x_ref[0]                      # (Kh, TN) parity-0 features
        x1 = x_ref[1]                      # (Kh, TN) parity-1 features

        # Per-pixel range (max - min) of each parity group: sublane reductions
        # over contiguous slabs, results are lane-dense (1, TN).
        std0 = jnp.max(x0, axis=0, keepdims=True) - jnp.min(x0, axis=0, keepdims=True)
        std1 = jnp.max(x1, axis=0, keepdims=True) - jnp.min(x1, axis=0, keepdims=True)

        xn0 = x0 / (std0 + 1e-6)
        xn1 = x1 / (std1 + 1e-6)

        # Transposed GEMM: Y^T = W0 @ Xn0 + W1 @ Xn1 + b   -> (Cout, TN), lane-dense.
        y = (jnp.dot(w_ref[0], xn0, preferred_element_type=jnp.float32)
             + jnp.dot(w_ref[1], xn1, preferred_element_type=jnp.float32)
             + b_ref[...])

        if activation:
            y = jnp.where(y >= 0, y, neg_slope * y)

        # Un-normalize: output rows [0, kh_out) are parity-0 channels, rest parity-1.
        orow = lax.broadcasted_iota(jnp.int32, y.shape, 0)
        y = y * (jnp.where(orow < kh_out, std0, std1) + 1e-6)

        if has_residual:
            y = y + r_ref[...]

        o_ref[...] = y.astype(o_ref.dtype)

    return kernel


def _conv_gemm_T(XT, WT, bT, RT, kh_out, activation, tile_n):
    """XT: (2, Kh, N)  WT: (2, Cout, Kh)  bT: (Cout, 1)  RT: (Cout, N) or None."""
    um, Kh, N = XT.shape
    Cout = WT.shape[1]
    assert um == 2
    assert tile_n % 128 == 0

    grid = pl.cdiv(N, tile_n)
    Npad = grid * tile_n
    if Npad != N:  # host-side pad of the pixel axis; padded cols are sliced off below
        XT = jnp.pad(XT, ((0, 0), (0, 0), (0, Npad - N)))
        if RT is not None:
            RT = jnp.pad(RT, ((0, 0), (0, Npad - N)))

    kernel = _make_kernel(kh_out, activation, RT is not None)

    in_specs = [
        pl.BlockSpec((um, Kh, tile_n), lambda i: (0, 0, i)),   # streaming X^T tile
        pl.BlockSpec((um, Cout, Kh), lambda i: (0, 0, 0)),     # resident weight
        pl.BlockSpec((Cout, 1), lambda i: (0, 0)),             # resident bias
    ]
    args = [XT, WT, bT]
    if RT is not None:
        in_specs.append(pl.BlockSpec((Cout, tile_n), lambda i: (0, i)))
        args.append(RT)

    yt = pl.pallas_call(
        kernel,
        out_shape=jax.ShapeDtypeStruct((Cout, Npad), jnp.float32),
        grid_spec=pltpu.PrefetchScalarGridSpec(
            num_scalar_prefetch=0,
            grid=(grid,),
            in_specs=in_specs,
            out_specs=pl.BlockSpec((Cout, tile_n), lambda i: (0, i)),
        ),
        compiler_params=pltpu.CompilerParams(dimension_semantics=("parallel",)),
    )(*args)
    return yt[:, :N]


# ------------------------------- host glue ------------------------------------

def _im2col_replicate(x, ksz):
    """patches[b, c, i, j, h, w] = replicate_pad(x)[b, c, h+i, w+j]."""
    B, C, H, W = x.shape
    p = (ksz - 1) // 2
    xp = jnp.pad(x, ((0, 0), (0, 0), (p, p), (p, p)), mode="edge")
    rows = []
    for i in range(ksz):
        cols = [xp[:, :, i:i + H, j:j + W] for j in range(ksz)]
        rows.append(jnp.stack(cols, axis=2))
    return jnp.stack(rows, axis=2)          # (B, C, k, k, H, W)


def _im2col_groups_T(x, ksz, um_dim=2):
    """Transposed, parity-grouped im2col: (um, (C//um)*k*k, B*H*W)."""
    B, C, H, W = x.shape
    assert C % um_dim == 0
    patches = _im2col_replicate(x, ksz)                               # (B, C, k, k, H, W)
    pg = patches.reshape(B, C // um_dim, um_dim, ksz, ksz, H, W)      # c -> (c', g)
    xt = jnp.transpose(pg, (2, 1, 3, 4, 0, 5, 6))                     # (g, c', ki, kj, B, H, W)
    return xt.reshape(um_dim, (C // um_dim) * ksz * ksz, B * H * W)


def _prep_weights(weights, biases, ksz, C, um_dim=2):
    """Build fused transposed GEMM weight (um, Cout_tot, Kh), bias (Cout_tot, 1).

    Fused output rows are ordered: all parity-0 output channels (conv after conv,
    channels ascending), then all parity-1 channels, so the in-kernel rescale only
    needs the single split point `kh_out`.  `rows[r] = (conv_index, channel)`.
    """
    k = ksz
    rows = [(ci, c)
            for g in range(um_dim)
            for ci, Wc in enumerate(weights)
            for c in range(Wc.shape[0]) if c % um_dim == g]
    kh_out = sum(1 for _, c in rows if c % um_dim == 0)

    wt_parts, b_parts = [], []
    for Wc, bc in zip(weights, biases):
        Cout_i = Wc.shape[0]
        Wr = Wc.reshape(Cout_i, C // um_dim, um_dim, k, k)            # (o, c', g, kh, kw)
        # Transposed conv-as-GEMM weight with the reference's kernel-axis swap:
        # patch element (c', i, j) pairs with W[o, c, j, i].
        Wt = jnp.transpose(Wr, (2, 0, 1, 4, 3)).reshape(
            um_dim, Cout_i, (C // um_dim) * k * k)                    # (g, o, Kh)
        wt_parts.append(Wt)
        b_parts.append(bc)

    WT = jnp.stack([wt_parts[ci][:, c, :] for ci, c in rows], axis=1)  # (um, Cout_tot, Kh)
    bT = jnp.stack([b_parts[ci][c] for ci, c in rows]).reshape(-1, 1)  # (Cout_tot, 1)
    return WT, bT, kh_out, rows


def _split_rows(Yt, rows, couts, B, H, W):
    """Split fused (Cout_tot, N) output back into per-conv NCHW tensors."""
    outs = []
    for ci, Cout_i in enumerate(couts):
        idx = sorted((r for r, (cj, _) in enumerate(rows) if cj == ci),
                     key=lambda r: rows[r][1])
        Yc = Yt[np.asarray(idx, dtype=np.int32)]                       # (Cout_i, N)
        outs.append(jnp.transpose(Yc.reshape(Cout_i, B, H, W), (1, 0, 2, 3)))
    return outs


def _pick_tile_n(N, max_tile=1024):
    """Lane-axis tile: multiple of 128, as large as sensible, but keep >=2 grid
    steps (when possible) so the 'parallel' axis can shard over v7x's two TCs."""
    if N <= 128:
        return 128
    t = min(max_tile, (N // 128) * 128)
    if pl.cdiv(N, t) < 2:
        half = max(128, -(-((N + 1) // 2) // 128) * 128)
        t = min(t, half)
    return t


def resblock_pallas(x, params, ksz, um_dim=2, tile_n=None):
    assert um_dim == 2
    B, C, H, W = x.shape
    N = B * H * W
    t = tile_n if tile_n is not None else _pick_tile_n(N)

    w1, b1 = params["layer1"]
    w2, b2 = params["layer2"]
    hidden = w1.shape[0]
    has_up = params.get("upscale") is not None

    # ---- fused upscale + layer1: share im2col and per-pixel range stats ----
    XT = _im2col_groups_T(x, ksz, um_dim)
    if has_up:
        w_u, b_u = params["upscale"]
        WT, bT, kh_out, rows = _prep_weights([w_u, w1], [b_u, b1], ksz, C, um_dim)
        Yt = _conv_gemm_T(XT, WT, bT, None, kh_out, True, t)
        res, h1 = _split_rows(Yt, rows, [hidden, hidden], B, H, W)
    else:
        WT, bT, kh_out, rows = _prep_weights([w1], [b1], ksz, C, um_dim)
        Yt = _conv_gemm_T(XT, WT, bT, None, kh_out, True, t)
        (h1,) = _split_rows(Yt, rows, [hidden], B, H, W)
        res = x

    # ---- layer2 with the residual add fused into the kernel ----
    XT2 = _im2col_groups_T(h1, ksz, um_dim)
    WT2, bT2, kh_out2, rows2 = _prep_weights([w2], [b2], ksz, hidden, um_dim)
    chan_order = np.asarray([c for _, c in rows2], dtype=np.int32)
    RT = jnp.transpose(res, (1, 0, 2, 3)).reshape(res.shape[1], N)[chan_order]
    Yt2 = _conv_gemm_T(XT2, WT2, bT2, RT, kh_out2, True, t)
    (out,) = _split_rows(Yt2, rows2, [hidden], B, H, W)
    return out


# ------------------------- pure-JAX reference (check) ------------------------

def conv2d_ref(x, W, b, ksz, activation=True, residual=None, um_dim=2):
    B, C, H, Wd = x.shape
    Cout = W.shape[0]
    patches = _im2col_replicate(x, ksz)
    out = patches.reshape(B, C // um_dim, um_dim, ksz, ksz, H, Wd)
    stds = (out.max(axis=(1, 3, 4), keepdims=True)
            - out.min(axis=(1, 3, 4), keepdims=True))           # (B,1,um,1,1,H,W)
    out = out / (stds + 1e-6)
    out = out.reshape(B, C, ksz, ksz, H, Wd)
    y = jnp.einsum("ocrs,bcsrhw->bohw", W, out) + b[None, :, None, None]
    if activation:
        y = jnp.where(y >= 0, y, 0.01 * y)
    stds_sq = stds[:, 0, :, 0, 0, :, :]                          # (B, um, H, W)
    y = y.reshape(B, Cout // um_dim, um_dim, H, Wd) * (stds_sq[:, None] + 1e-6)
    y = y.reshape(B, Cout, H, Wd)
    if residual is not None:
        y = y + residual
    return y


def resblock_ref(x, params, ksz):
    w_u, b_u = params["upscale"]
    w1, b1 = params["layer1"]
    w2, b2 = params["layer2"]
    residual = conv2d_ref(x, w_u, b_u, ksz, activation=True)
    out = conv2d_ref(x, w1, b1, ksz, activation=True)
    out = conv2d_ref(out, w2, b2, ksz, activation=True, residual=residual)
    return out


# ----------------------------------- main ------------------------------------

if __name__ == "__main__":
    B, Cin, H, W = 2, 4, 16, 16
    hidden, ksz = 8, 3                      # input_channels != hidden_dim -> upscale branch active

    key = jax.random.PRNGKey(0)
    keys = jax.random.split(key, 7)
    params = {
        "layer1": (0.1 * jax.random.normal(keys[0], (hidden, Cin, ksz, ksz), jnp.float32),
                   0.1 * jax.random.normal(keys[1], (hidden,), jnp.float32)),
        "layer2": (0.1 * jax.random.normal(keys[2], (hidden, hidden, ksz, ksz), jnp.float32),
                   0.1 * jax.random.normal(keys[3], (hidden,), jnp.float32)),
        "upscale": (0.1 * jax.random.normal(keys[4], (hidden, Cin, ksz, ksz), jnp.float32),
                    0.1 * jax.random.normal(keys[5], (hidden,), jnp.float32)),
    }
    x = jax.random.normal(keys[6], (B, Cin, H, W), jnp.float32)

    out = jax.block_until_ready(resblock_pallas(x, params, ksz))

    ref = resblock_ref(x, params, ksz)
    np.testing.assert_allclose(np.asarray(out), np.asarray(ref), rtol=1e-3, atol=1e-3)

    print("KERNEL_OK")
</pallas_src>

<mosaic_0001>
module attributes {stable_mosaic.version = 11 : i64} {
  func.func @kernel(%arg0: i32, %arg1: memref<2x18x256xf32, #tpu.memory_space<vmem>>, %arg2: memref<2x16x18xf32, #tpu.memory_space<vmem>>, %arg3: memref<16x1xf32, #tpu.memory_space<vmem>>, %arg4: memref<16x256xf32, #tpu.memory_space<vmem>>) attributes {dimension_semantics = [#tpu.dimension_semantics<parallel>], iteration_bounds = array<i64: 2>, scalar_prefetch = 0 : i64, scratch_operands = 0 : i64, tpu.core_type = #tpu.core_type<tc>, window_params = [{transform_indices = @transform_0, window_bounds = array<i64: 2, 18, 256>}, {pipeline_mode = #tpu.pipeline_mode<synchronous>, transform_indices = @transform_1, window_bounds = array<i64: 2, 16, 18>}, {pipeline_mode = #tpu.pipeline_mode<synchronous>, transform_indices = @transform_2, window_bounds = array<i64: 16, 1>}, {transform_indices = @transform_3, window_bounds = array<i64: 16, 256>}]} {
    %c0 = arith.constant 0 : index
    %c0_0 = arith.constant 0 : index
    %c0_1 = arith.constant 0 : index
    %0 = vector.load %arg1[%c0, %c0_0, %c0_1] : memref<2x18x256xf32, #tpu.memory_space<vmem>>, vector<1x18x256xf32>
    %1 = vector.shape_cast %0 : vector<1x18x256xf32> to vector<18x256xf32>
    %c1 = arith.constant 1 : index
    %c0_2 = arith.constant 0 : index
    %c0_3 = arith.constant 0 : index
    %2 = vector.load %arg1[%c1, %c0_2, %c0_3] : memref<2x18x256xf32, #tpu.memory_space<vmem>>, vector<1x18x256xf32>
    %3 = vector.shape_cast %2 : vector<1x18x256xf32> to vector<18x256xf32>
    %cst = arith.constant dense<0xFF800000> : vector<256xf32>
    %4 = vector.multi_reduction <maximumf>, %1, %cst [0] : vector<18x256xf32> to vector<256xf32>
    %5 = vector.shape_cast %4 : vector<256xf32> to vector<1x256xf32>
    %cst_4 = arith.constant dense<0x7F800000> : vector<256xf32>
    %6 = vector.multi_reduction <minimumf>, %1, %cst_4 [0] : vector<18x256xf32> to vector<256xf32>
    %7 = vector.shape_cast %6 : vector<256xf32> to vector<1x256xf32>
    %8 = arith.subf %5, %7 : vector<1x256xf32>
    %cst_5 = arith.constant dense<0xFF800000> : vector<256xf32>
    %9 = vector.multi_reduction <maximumf>, %3, %cst_5 [0] : vector<18x256xf32> to vector<256xf32>
    %10 = vector.shape_cast %9 : vector<256xf32> to vector<1x256xf32>
    %cst_6 = arith.constant dense<0x7F800000> : vector<256xf32>
    %11 = vector.multi_reduction <minimumf>, %3, %cst_6 [0] : vector<18x256xf32> to vector<256xf32>
    %12 = vector.shape_cast %11 : vector<256xf32> to vector<1x256xf32>
    %13 = arith.subf %10, %12 : vector<1x256xf32>
    %cst_7 = arith.constant 9.99999997E-7 : f32
    %14 = vector.broadcast %cst_7 : f32 to vector<1x256xf32>
    %15 = arith.addf %8, %14 : vector<1x256xf32>
    %16 = vector.broadcast %15 : vector<1x256xf32> to vector<18x256xf32>
    %17 = arith.divf %1, %16 : vector<18x256xf32>
    %cst_8 = arith.constant 9.99999997E-7 : f32
    %18 = vector.broadcast %cst_8 : f32 to vector<1x256xf32>
    %19 = arith.addf %13, %18 : vector<1x256xf32>
    %20 = vector.broadcast %19 : vector<1x256xf32> to vector<18x256xf32>
    %21 = arith.divf %3, %20 : vector<18x256xf32>
    %c0_9 = arith.constant 0 : index
    %c0_10 = arith.constant 0 : index
    %c0_11 = arith.constant 0 : index
    %22 = vector.load %arg2[%c0_9, %c0_10, %c0_11] : memref<2x16x18xf32, #tpu.memory_space<vmem>>, vector<1x16x18xf32>
    %23 = vector.shape_cast %22 : vector<1x16x18xf32> to vector<16x18xf32>
    %cst_12 = arith.constant dense<0.000000e+00> : vector<16x256xf32>
    %24 = tpu.matmul %23, %17, %cst_12 {dimension_numbers = #tpu.dot_dimension_numbers<[1], [0], [0], [1], [0, 0, 1, 1], [], []>} : vector<16x18xf32>, vector<18x256xf32>, vector<16x256xf32> -> vector<16x256xf32>
    %c1_13 = arith.constant 1 : index
    %c0_14 = arith.constant 0 : index
    %c0_15 = arith.constant 0 : index
    %25 = vector.load %arg2[%c1_13, %c0_14, %c0_15] : memref<2x16x18xf32, #tpu.memory_space<vmem>>, vector<1x16x18xf32>
    %26 = vector.shape_cast %25 : vector<1x16x18xf32> to vector<16x18xf32>
    %cst_16 = arith.constant dense<0.000000e+00> : vector<16x256xf32>
    %27 = tpu.matmul %26, %21, %cst_16 {dimension_numbers = #tpu.dot_dimension_numbers<[1], [0], [0], [1], [0, 0, 1, 1], [], []>} : vector<16x18xf32>, vector<18x256xf32>, vector<16x256xf32> -> vector<16x256xf32>
    %28 = arith.addf %24, %27 : vector<16x256xf32>
    %c0_17 = arith.constant 0 : index
    %c0_18 = arith.constant 0 : index
    %29 = vector.load %arg3[%c0_17, %c0_18] : memref<16x1xf32, #tpu.memory_space<vmem>>, vector<16x1xf32>
    %30 = vector.broadcast %29 : vector<16x1xf32> to vector<16x256xf32>
    %31 = arith.addf %28, %30 : vector<16x256xf32>
    %cst_19 = arith.constant 0.000000e+00 : f32
    %32 = vector.broadcast %cst_19 : f32 to vector<16x256xf32>
    %33 = arith.cmpf oge, %31, %32 : vector<16x256xf32>
    %cst_20 = arith.constant 0.00999999977 : f32
    %34 = vector.broadcast %cst_20 : f32 to vector<16x256xf32>
    %35 = arith.mulf %34, %31 : vector<16x256xf32>
    %36 = arith.select %33, %31, %35 : vector<16x256xi1>, vector<16x256xf32>
    %37 = tpu.iota {dimensions = array<i32: 0>} : vector<16x256xi32>
    %c8_i32 = arith.constant 8 : i32
    %38 = vector.broadcast %c8_i32 : i32 to vector<16x256xi32>
    %39 = arith.cmpi slt, %37, %38 : vector<16x256xi32>
    %40 = vector.shape_cast %8 : vector<1x256xf32> to vector<1x256xf32>
    %41 = vector.broadcast %40 : vector<1x256xf32> to vector<16x256xf32>
    %42 = vector.shape_cast %13 : vector<1x256xf32> to vector<1x256xf32>
    %43 = vector.broadcast %42 : vector<1x256xf32> to vector<16x256xf32>
    %44 = arith.select %39, %41, %43 : vector<16x256xi1>, vector<16x256xf32>
    %cst_21 = arith.constant 9.99999997E-7 : f32
    %45 = vector.broadcast %cst_21 : f32 to vector<16x256xf32>
    %46 = arith.addf %44, %45 : vector<16x256xf32>
    %47 = arith.mulf %36, %46 : vector<16x256xf32>
    %c0_22 = arith.constant 0 : index
    %c0_23 = arith.constant 0 : index
    %48 = vector.load %arg4[%c0_22, %c0_23] : memref<16x256xf32, #tpu.memory_space<vmem>>, vector<16x256xf32>
    tpu.vector_store %arg4[%c0_22, %c0_23], %47 {strides = array<i32>} : memref<16x256xf32, #tpu.memory_space<vmem>>, vector<16x256xf32>,
    return
  }
  func.func @transform_0(%arg0: i32) -> (i32, i32, i32) {
    %c0_i32 = arith.constant 0 : i32
    %c0_i32_0 = arith.constant 0 : i32
    %c0_i32_1 = arith.constant 0 : i32
    return %c0_i32, %c0_i32_0, %arg0 : i32, i32, i32
  }
  func.func @transform_1(%arg0: i32) -> (i32, i32, i32) {
    %c0_i32 = arith.constant 0 : i32
    %c0_i32_0 = arith.constant 0 : i32
    %c0_i32_1 = arith.constant 0 : i32
    %c0_i32_2 = arith.constant 0 : i32
    return %c0_i32, %c0_i32_0, %c0_i32_1 : i32, i32, i32
  }
  func.func @transform_2(%arg0: i32) -> (i32, i32) {
    %c0_i32 = arith.constant 0 : i32
    %c0_i32_0 = arith.constant 0 : i32
    %c0_i32_1 = arith.constant 0 : i32
    return %c0_i32, %c0_i32_0 : i32, i32
  }
  func.func @transform_3(%arg0: i32) -> (i32, i32) {
    %c0_i32 = arith.constant 0 : i32
    %c0_i32_0 = arith.constant 0 : i32
    return %c0_i32, %arg0 : i32, i32
  }
}

</mosaic_0001>

<bundles_post_ra>
// kernel: tpu_custom_call.1
= control target key start
LH: loop header
LB: loop body
LE: loop exit
PB: predicated region body
PF: predicated region fallthrough
CT: control target
= control target key end

     0   :  { %8 = vsyncpa [#allocation4], 0  ;;  %s1050_s0 = inlined_call_operand.vmem [shape: f32[2,18,512], index: 0, kind: input, shape index: {}]   ;;  %s1051_s1 = inlined_call_operand.vmem [shape: f32[2,16,18], index: 1, kind: input, shape index: {}]   ;;  %s1052_s2 = inlined_call_operand.vmem [shape: f32[16,1], index: 2, kind: input, shape index: {}]   ;;  %s1053_s3 = inlined_call_operand.hbm [shape: f32[16,512], index: 3, kind: output, shape index: {}]  }
   0x1   :  { %10 = vsyncpa [#allocation4 + $0x1], 0  ;;  %s811_s12 = smov 0   ;;  %s813_s13 = smov 0  }
   0x2   :  { %s815_s14 = smov 0   ;;  %s817_s15 = smov 0  }
   0x3 LB: > { %s637_s16 = sadd.s32 4294967295, %s783_s15   ;;  %s638_s17 = sadd.s32 4294967294, %s783_s15   ;;  %s783_s15 = sphi %s817_s15, %s1059_s15   ;;  %s779_s14 = sphi %s815_s14, %s1058_s14   ;;  %s775_s13 = sphi %s813_s13, %s1057_s13   ;;  %s771_s12 = sphi %s811_s12, %s1056_s12  }
   0x4   : > { %s834_s18 = sadd.s32 1, %s783_s15   ;;  %s23_s19 = sadd.s32 1, %s779_s14 }
   0x5   : > { %s20_s20 = ssub.s32 %s783_s15, %s834_s18  ;;  %p30_p0 = scmp.ne.s32.totalorder %s779_s14, %s775_s13 }
   0x6   : > { %p21_p1 = scmp.eq.s32.totalorder %s20_s20, 0  ;;  %p31_p2 = scmp.eq.s32.totalorder %s783_s15, 0 }
   0x7   : > { %p102_p3 = scmp.eq.s32.totalorder %s637_s16, 1  ;;  %p107_p4 = scmp.ne.s32.totalorder %s775_s13, %s771_s12 }
   0x8   : > { %s847_s21 = scalar_select %p21_p1, %s779_s14, %s23_s19  }
   0x9   : > { %p32_p5 = por %p31_p2, %p30_p0  ;;  %p849_p6 = por %p102_p3, %p30_p0 }
   0xa   : > { %p108_p7 = scmp.eq.s32.totalorder %s638_s17, 1  ;;  %p640_p9 = scmp.ge.s32.totalorder %s783_s15, 2 }
   0xc   : > { %p853_p8 = por %p108_p7, %p107_p4  ;;  %130 = sbr.rel (%p640_p9) target bundleno = 27 (0x1b), region = 24 }
  0x11   : > { %133 = sbr.rel (!%p32_p5) target bundleno = 27 (0x1b), region = 28  ;;  %s135_s24 = sand.u32 (%p32_p5), 1, %s779_s14  }
  0x12   : > { %s666_s25 = sshll.u32 (%p32_p5), %s783_s15, 4  ;;  %s668_s26 = smul.u32 (%p32_p5), 96, %s135_s24 }
  0x13   : > { %s140_s29 = scalar_lea.vmem (%p32_p5), %s1050_s0, %s666_s25 }
  0x14   : > { %v153_v0 = vld [vmem:[%s140_s29] sm:$0xff] (%p32_p5)  ;;  %v155_v1 = vld [vmem:[%s140_s29 + $0x8] sm:$0xff] (%p32_p5)  ;;  %s137_s30 = scalar_lea.vmem (%p32_p5), [#allocation2], %s668_s26 }
  0x15   : > { %v157_v2 = vld [vmem:[%s140_s29 + $0x20] sm:$0xff] (%p32_p5)  ;;  %v159_v3 = vld [vmem:[%s140_s29 + $0x28] sm:$0xff] (%p32_p5)  ;;  %154 = vst [vmem:[%s137_s30] sm:$0xff] (%p32_p5), %v153_v0  ;;  %156 = vst [vmem:[%s137_s30 + $0x8] sm:$0xff] (%p32_p5), %v155_v1 }
  0x16   : > { %v161_v4 = vld [vmem:[%s140_s29 + $0x40] sm:$0xff]  ;;  %v163_v5 = vld [vmem:[%s140_s29 + $0x48] sm:$0xff]  ;;  %158 = vst [vmem:[%s137_s30 + $0x10] sm:$0xff] %v157_v2  ;;  %160 = vst [vmem:[%s137_s30 + $0x18] sm:$0xff] %v159_v3 }
  0x17   : > { %162 = vst [vmem:[%s137_s30 + $0x20] sm:$0xff] %v161_v4  ;;  %164 = vst [vmem:[%s137_s30 + $0x28] sm:$0xff] %v163_v5  ;;  %v165_v6 = vld [vmem:[%s140_s29 + $0x60] sm:$0xff]  ;;  %v167_v7 = vld [vmem:[%s140_s29 + $0x68] sm:$0xff] }
  0x18   : > { %v169_v8 = vld [vmem:[%s140_s29 + $0x80] sm:$0xff]  ;;  %166 = vst [vmem:[%s137_s30 + $0x30] sm:$0xff] %v165_v6  ;;  %168 = vst [vmem:[%s137_s30 + $0x38] sm:$0xff] %v167_v7  ;;  %v171_v9 = vld [vmem:[%s140_s29 + $0x88] sm:$0xff] }
  0x19   : > { %170 = vst [vmem:[%s137_s30 + $0x40] sm:$0xff] %v169_v8  ;;  %v173_v10 = vld [vmem:[%s140_s29 + $0xa0] sm:$0xff]  ;;  %v175_v11 = vld [vmem:[%s140_s29 + $0xa8] sm:$0xff]  ;;  %172 = vst [vmem:[%s137_s30 + $0x48] sm:$0xff] %v171_v9 }
  0x1a   : > { %174 = vst [vmem:[%s137_s30 + $0x50] sm:$0xff] %v173_v10  ;;  %176 = vst [vmem:[%s137_s30 + $0x58] sm:$0xff] %v175_v11 }
  0x1b PF: > { %p643_p10 = scmp.ge.s32.totalorder %s783_s15, 1  ;;  %p181_p11 = scmp.lt.s32.totalorder %s783_s15, 3 }
  0x1d   : > { %p182_p12 = pnand %p643_p10, %p181_p11 }
  0x1e   : > { %s868_s4 = sand.u32 (!%p182_p12), 1, %s775_s13   ;;  %s787_s10 = smov (!%p182_p12), [#allocation3]  }
  0x1f   : > { %185 = sbr.rel (%p182_p12) target bundleno = 309 (0x135), region = 51  ;;  %s644_s28 = sshll.u32 (!%p182_p12), %s868_s4, 5 }
  0x20   : > { %s669_s5 = smul.u32 (!%p182_p12), 96, %s868_s4  ;;  %s210_s29 = scalar_lea.vmem (!%p182_p12), [#allocation3], %s644_s28 }
  0x21   : > { %s570_s30 = sshll.u32 (!%p182_p12), %s210_s29, 4  ;;  %s727_s11 = sshll.u32 (!%p182_p12), %s787_s10, 4  ;;  %s1001_s30 = int_to_ptr.vmem [resolvable:$true] %s570_s30  ;;  %s728_s11 = int_to_ptr.vmem [resolvable:$false] %s727_s11 }
  0x22   : > { %s876_s8 = scalar_lea.vmem (!%p182_p12), [#allocation2], %s669_s5  ;;  %s667_s5 = sshll.u32 (!%p182_p12), %s637_s16, 8 }
  0x23   : > { %s557_s16 = scalar_lea.sflag (!%p182_p12), [#allocation4], %s868_s4  ;;  %s723_s9 = scalar_lea.vmem (!%p182_p12), %s1001_s30, 512 }
  0x24   : > { %v785_v12 = vmov 0.0   ;;  %v507_v13 = vld [vmem:[%s1052_s2] sm:$0xff]  ;;  %vm226_vm0 = vcmask 1041408   ;;  %v786_v14 = vmov 0   ;;  %v879_v15 = vld [vmem:[%s876_s8 + $0x38] sm:$0xff]  ;;  %v508_v17 = vld [vmem:[%s1052_s2 + $0x8] sm:$0xff]  ;;  %p724_p13 = scmp.ne.s32.totalorder %s1001_s30, %s723_s9  ;;  %p730_p2 = scmp.lt.s32.totalorder %s1001_s30, %s728_s11 }
  0x25   : > { %405 = vmatprep.mubr.f32.mxu0 %v785_v12  ;;  %494 = vmatprep.mubr.f32.mxu1 %v785_v12  ;;  %v882_v16 = vld [vmem:[%s876_s8 + $0x58] sm:$0x3]  ;;  %v888_v18 = vld [vmem:[%s876_s8 + $0x48] sm:$0xff]  ;;  %v910_v28 = vld [vmem:[%s876_s8 + $0x30] sm:$0xff]  ;;  %vm328_vm1 = vcmask 146432   ;;  %s729_s17 = scalar_lea.vmem %s728_s11, 1024 }
  0x26   : > { %714 = vset.pattern.permute.xlu0 %v786_v14  ;;  %v274_v19 = vsel %vm226_vm0, %v882_v16, -inf  ;;  %v292_v20 = vsel %vm226_vm0, %v882_v16, inf  ;;  %v895_v21 = vld [vmem:[%s876_s8 + $0x8] sm:$0xff]  ;;  %v903_v25 = vld [vmem:[%s876_s8 + $0x18] sm:$0xff]  ;;  %v913_v29 = vld [vmem:[%s876_s8 + $0x50] sm:$0x3]  ;;  %p725_p0 = pnand %p724_p13, %p849_p6  ;;  %p731_p3 = scmp.lt.s32.totalorder %s729_s17, %s723_s9 }
  0x27   : > { %511 = vperm.xlu0 %714, %v507_v13   ;;  %v898_v22 = vld [vmem:[%s876_s8 + $0x28] sm:$0x3]  ;;  %v275_v23 = vmax.f32 %v879_v15, %v274_v19  ;;  %v293_v24 = vmin.f32 %v879_v15, %v292_v20  ;;  %v918_v32 = vld [vmem:[%s876_s8 + $0x40] sm:$0xff]  ;;  %v265_v33 = vsel %vm226_vm0, %v913_v29, -inf  ;;  %v283_v34 = vsel %vm226_vm0, %v913_v29, inf  ;;  %v943_v49 = vld [vmem:[%s876_s8 + $0x10] sm:$0xff] }
  0x28   : > { %v236_v26 = vsel %vm226_vm0, %v898_v22, -inf  ;;  %v254_v27 = vsel %vm226_vm0, %v898_v22, inf  ;;  %v925_v35 = vld [vmem:[%s876_s8 + $0x20] sm:$0x3]  ;;  %v266_v38 = vmax.f32 %v910_v28, %v265_v33  ;;  %v284_v39 = vmin.f32 %v910_v28, %v283_v34  ;;  %p726_p1 = pneg %p725_p0  ;;  %p732_p4 = por %p731_p3, %p730_p2 }
  0x29   : > { %v237_v30 = vmax.f32 %v895_v21, %v236_v26  ;;  %v255_v31 = vmin.f32 %v895_v21, %v254_v27  ;;  %v276_v36 = vmax.f32 %v275_v23, %v888_v18  ;;  %v294_v37 = vmin.f32 %v293_v24, %v888_v18  ;;  %v932_v40 = vld [vmem:[%s876_s8] sm:$0xff]  ;;  %s1006_s8 = scalar_lea.hbm %s1053_s3, %s667_s5 }
  0x2a   : > { %v227_v43 = vsel %vm226_vm0, %v925_v35, -inf  ;;  %v245_v44 = vsel %vm226_vm0, %v925_v35, inf  ;;  %v267_v47 = vmax.f32 %v266_v38, %v918_v32  ;;  %v285_v48 = vmin.f32 %v284_v39, %v918_v32  ;;  %p733_p5 = pnand %p732_p4, %p726_p1 }
  0x2b   : > { %516 = vperm.xlu0 %714, %v508_v17   ;;  %v238_v41 = vmax.f32 %v237_v30, %v903_v25  ;;  %v256_v42 = vmin.f32 %v255_v31, %v903_v25  ;;  %v277_v45 = vrot.slane %v276_v36, 4  ;;  %v295_v46 = vrot.slane %v294_v37, 4 }
  0x2c   : > { %v228_v52 = vmax.f32 %v932_v40, %v227_v43  ;;  %v246_v53 = vmin.f32 %v932_v40, %v245_v44  ;;  %v268_v56 = vrot.slane %v267_v47, 4  ;;  %v286_v57 = vrot.slane %v285_v48, 4 }
  0x2d   : > { %v239_v50 = vrot.slane %v238_v41, 4  ;;  %v257_v51 = vrot.slane %v256_v42, 4  ;;  %v278_v54 = vmax.f32 %v276_v36, %v277_v45  ;;  %v296_v55 = vmin.f32 %v294_v37, %v295_v46 }
  0x2e   : > { %v229_v60 = vmax.f32 %v228_v52, %v943_v49  ;;  %v247_v61 = vmin.f32 %v246_v53, %v943_v49  ;;  %v269_v0 = vmax.f32 %v267_v47, %v268_v56  ;;  %v287_v1 = vmin.f32 %v285_v48, %v286_v57 }
  0x2f   : > { %v240_v58 = vmax.f32 %v238_v41, %v239_v50  ;;  %v258_v59 = vmin.f32 %v256_v42, %v257_v51  ;;  %v279_v62 = vrot.slane %v278_v54, 2  ;;  %v297_v63 = vrot.slane %v296_v55, 2 }
  0x30   : > { %v230_v4 = vrot.slane %v229_v60, 4  ;;  %v248_v5 = vrot.slane %v247_v61, 4  ;;  %v270_v8 = vrot.slane %v269_v0, 2  ;;  %v288_v9 = vrot.slane %v287_v1, 2 }
  0x31   : > { %v241_v2 = vrot.slane %v240_v58, 2  ;;  %v259_v3 = vrot.slane %v258_v59, 2  ;;  %v280_v6 = vmax.f32 %v278_v54, %v279_v62  ;;  %v298_v7 = vmin.f32 %v296_v55, %v297_v63 }
  0x32   : > { %v231_v13 = vmax.f32 %v229_v60, %v230_v4  ;;  %v249_v14 = vmin.f32 %v247_v61, %v248_v5  ;;  %v271_v20 = vmax.f32 %v269_v0, %v270_v8  ;;  %v289_v23 = vmin.f32 %v287_v1, %v288_v9 }
  0x33   : > { %v242_v10 = vmax.f32 %v240_v58, %v241_v2  ;;  %v260_v11 = vmin.f32 %v258_v59, %v259_v3  ;;  %v281_v17 = vrot.slane %v280_v6, 1  ;;  %v299_v19 = vrot.slane %v298_v7, 1 }
  0x34   : > { %v232_v27 = vrot.slane %v231_v13, 2  ;;  %v250_v30 = vrot.slane %v249_v14, 2  ;;  %v272_v34 = vrot.slane %v271_v20, 1  ;;  %v290_v36 = vrot.slane %v289_v23, 1 }
  0x35   : > { %v243_v24 = vrot.slane %v242_v10, 1  ;;  %v261_v26 = vrot.slane %v260_v11, 1  ;;  %v282_v31 = vmax.f32 %v280_v6, %v281_v17  ;;  %v300_v33 = vmin.f32 %v298_v7, %v299_v19 }
  0x36   : > { %v233_v39 = vmax.f32 %v231_v13, %v232_v27  ;;  %v251_v41 = vmin.f32 %v249_v14, %v250_v30  ;;  %v273_v43 = vmax.f32 %v271_v20, %v272_v34  ;;  %v291_v44 = vmin.f32 %v289_v23, %v290_v36 }
  0x37   : > { %v244_v37 = vmax.f32 %v242_v10, %v243_v24  ;;  %v262_v38 = vmin.f32 %v260_v11, %v261_v26  ;;  %v302_v42 = vsub.f32 %v282_v31, %v300_v33 }
  0x38   : > { %v234_v46 = vrot.slane %v233_v39, 1  ;;  %v252_v47 = vrot.slane %v251_v41, 1  ;;  %v301_v50 = vsub.f32 %v273_v43, %v291_v44 }
  0x39   : > { %v264_v45 = vsub.f32 %v244_v37, %v262_v38  ;;  %v949_v48 = vadd.f32 1e-06, %v302_v42 }
  0x3a   : > { %v235_v52 = vmax.f32 %v233_v39, %v234_v46  ;;  %v253_v53 = vmin.f32 %v251_v41, %v252_v47  ;;  %v954_v54 = vadd.f32 1e-06, %v301_v50 }
  0x3b   : > { %v951_v51 = vadd.f32 1e-06, %v264_v45  ;;  %715 = vrcp.f32 %v949_v48 }
  0x3c   : > { %v263_v55 = vsub.f32 %v235_v52, %v253_v53 }
  0x3d   : > { %717 = vrcp.f32 %v951_v51 }
  0x3e   : > { %719 = vrcp.f32 %v954_v54  ;;  %v958_v56 = vadd.f32 1e-06, %v263_v55 }
  0x40   : > { %721 = vrcp.f32 %v958_v56 }
  0x48   : > { %v716_v57 = vpop.eup %715 }
  0x49   : > { %v322_v59 = vmul.f32 %v716_v57, %v882_v16  ;;  %v320_v62 = vmul.f32 %v716_v57, %v888_v18  ;;  %v318_v1 = vmul.f32 %v716_v57, %v879_v15 }
  0x4a   : > { %v718_v58 = vpop.eup %717 }
  0x4b   : > { %v720_v60 = vpop.eup %719  ;;  %v312_v61 = vmul.f32 %v718_v58, %v898_v22  ;;  %653 = vmatprep.subr.msk.mxu0 %vm226_vm0, %v322_v59  ;;  %v310_v16 = vmul.f32 %v718_v58, %v903_v25  ;;  %v323_v25 = vld [vmem:[%s1051_s1] sm:$0xff] }
  0x4c   : > { %v321_v63 = vmul.f32 %v720_v60, %v913_v29  ;;  %v319_v0 = vmul.f32 %v720_v60, %v918_v32  ;;  %v316_v3 = vmul.f32 %v720_v60, %v910_v28  ;;  %v308_v29 = vmul.f32 %v718_v58, %v895_v21  ;;  %v651_v32 = vld [vmem:[%s1051_s1 + $0x10] sm:$0xff]  ;;  %v652_v21 = vld [vmem:[%s1051_s1 + $0x18] sm:$0xff]  ;;  %v324_v28 = vld [vmem:[%s1051_s1 + $0x8] sm:$0xff] }
  0x4d   : > { %657 = vmatprep.subr.msk.mxu1 %vm226_vm0, %v312_v61  ;;  %v722_v2 = vpop.eup %721 }
  0x4e   : > { %654 = vmatpush1.msk.msra.mxu0 %vm226_vm0, %v321_v63  ;;  %v311_v22 = vmul.f32 %v722_v2, %v925_v35  ;;  %v309_v18 = vmul.f32 %v722_v2, %v943_v49  ;;  %v306_v15 = vmul.f32 %v722_v2, %v932_v40 }
  0x4f   : > { %369 = vmatprep.subr.mxu0 %v320_v62 }
  0x50   : > { %370 = vmatpush1.msra.mxu0 %v319_v0  ;;  %658 = vmatpush1.msk.msra.mxu1 %vm226_vm0, %v311_v22 }
  0x51   : > { %371 = vmatprep.subr.mxu0 %v318_v1  ;;  %458 = vmatprep.subr.mxu1 %v310_v16 }
  0x52   : > { %372 = vmatpush1.msra.mxu0 %v316_v3  ;;  %459 = vmatpush1.msra.mxu1 %v309_v18 }
  0x53   : > { %655 = vmatmul.mubr.msk.f32.vlgmr.msra.gmra.mxu0 %vm328_vm1, %v651_v32  ;;  %460 = vmatprep.subr.mxu1 %v308_v29 }
  0x54   : > { %411 = vmatprep.mubr.f32.mxu0 %v785_v12  ;;  %461 = vmatpush1.msra.mxu1 %v306_v15 }
  0x55   : > { %659 = vmatmul.mubr.msk.f32.vlgmr.msra.gmra.mxu1 %vm328_vm1, %v323_v25 }
  0x56   : > { %500 = vmatprep.mubr.f32.mxu1 %v785_v12 }
  0x57   : > { %656 = vmatmul.mubr.msk.f32.gmra.mxu0 %vm328_vm1, %v652_v21 }
  0x59   : > { %660 = vmatmul.mubr.msk.f32.gmra.mxu1 %vm328_vm1, %v324_v28 }
  0xa2   : > { %v512_v49 = vpop.permute.xlu0 %511 }
  0xa6   : > { %v517_v17 = vpop.permute.xlu0 %516 }
 0x113   : > { %v407_v35 = vpop.f32.mrf.mxu0 }
 0x115   : > { %v409_v40 = vpop.f32.mrf.mxu0  ;;  %v496_v4 = vpop.f32.mrf.mxu1 }
 0x116   : > { %v497_v5 = vadd.f32 %v496_v4, %v407_v35 }
 0x117   : > { %v413_v6 = vpop.f32.mrf.mxu0  ;;  %v498_v7 = vpop.f32.mrf.mxu1 }
 0x118   : > { %v519_v8 = vadd.f32 %v512_v49, %v497_v5  ;;  %v499_v9 = vadd.f32 %v498_v7, %v409_v40 }
 0x119   : > { %v502_v10 = vpop.f32.mrf.mxu1  ;;  %v415_v14 = vpop.f32.mrf.mxu0 }
 0x11a   : > { %vm523_vm2 = vcmp.ge.f32.partialorder %v519_v8, 0.0  ;;  %v527_v12 = vmul.f32 0.01, %v519_v8  ;;  %v520_v11 = vadd.f32 %v512_v49, %v499_v9  ;;  %v503_v13 = vadd.f32 %v502_v10, %v413_v6 }
 0x11b   : > { %v504_v19 = vpop.f32.mrf.mxu1 }
 0x11c   : > { %v531_v20 = vsel %vm523_vm2, %v519_v8, %v527_v12  ;;  %vm524_vm3 = vcmp.ge.f32.partialorder %v520_v11, 0.0  ;;  %v528_v23 = vmul.f32 0.01, %v520_v11  ;;  %v521_v24 = vadd.f32 %v517_v17, %v503_v13 }
 0x11d   : > { %v548_v26 = vmul.f32 %v531_v20, %v958_v56  ;;  %v505_v27 = vadd.f32 %v504_v19, %v415_v14 }
 0x11e   : > { %v532_v30 = vsel %vm524_vm3, %v520_v11, %v528_v23  ;;  %vm525_vm4 = vcmp.ge.f32.partialorder %v521_v24, 0.0  ;;  %v529_v31 = vmul.f32 0.01, %v521_v24 }
 0x11f   : > { %552 = vst [vmem:[%s210_s29] sm:$0xff] %v548_v26  ;;  %v549_v33 = vmul.f32 %v532_v30, %v951_v51  ;;  %v522_v34 = vadd.f32 %v517_v17, %v505_v27 }
 0x120   : > { %v533_v36 = vsel %vm525_vm4, %v521_v24, %v529_v31 }
 0x121   : > { %553 = vst [vmem:[%s210_s29 + $0x8] sm:$0xff] %v549_v33  ;;  %v550_v37 = vmul.f32 %v533_v36, %v954_v54  ;;  %vm526_vm5 = vcmp.ge.f32.partialorder %v522_v34, 0.0  ;;  %v530_v38 = vmul.f32 0.01, %v522_v34 }
 0x123   : > { %554 = vst [vmem:[%s210_s29 + $0x10] sm:$0xff] %v550_v37  ;;  %v534_v39 = vsel %vm526_vm5, %v522_v34, %v530_v38 }
 0x124   : > { %v551_v41 = vmul.f32 %v534_v39, %v949_v48 }
 0x126   : > { %555 = vst [vmem:[%s210_s29 + $0x18] sm:$0xff] %v551_v41 }
 0x127   : > { %736 = shalt.err (!%p733_p5)
}
 0x128   : > { %s737_s19 = scalar_lea.hbm %s1006_s8, 512  ;;  %s741_s25 = scalar_lea.hbm %s1053_s3, 1024 }
 0x129   : > { %p738_p7 = scmp.ne.s32.totalorder %s1006_s8, %s737_s19  ;;  %p742_p12 = scmp.lt.s32.totalorder %s1006_s8, %s1053_s3 }
 0x12a   : > { %p743_p13 = scmp.lt.s32.totalorder %s741_s25, %s737_s19 }
 0x12b   : > { %p739_p10 = pnand %p738_p7, %p849_p6 }
 0x12c   : > { %p744_p0 = por %p743_p13, %p742_p12 }
 0x12d   : > { %p740_p11 = pneg %p739_p10 }
 0x12f   : > { %p745_p1 = pnand %p744_p0, %p740_p11 }
 0x131   : > { %748 = shalt.err (!%p745_p1)
}
 0x132   : > { %s788_s28 = smov 256   ;;  %s789_s29 = smov 512  }
 0x133   : > { %s790_s5 = smov 16  }
 0x134   : > { %670 = dma.vmem_to_hbm [thread:$0]  (%p849_p6), %s1001_s30, 512, %s1006_s8, %s557_s16, %s788_s28, %s789_s29, %s790_s5  }
 0x135 PF: > { %s585_s6 = sand.u32 1, %s771_s12   ;;  %p673_p2 = pnand %p640_p9, %p853_p8 }
 0x136   : > { %s586_s7 = scalar_lea.sflag [#allocation4], %s585_s6 }
 0x137   : > { %p674_p3 = pneg %p673_p2 }
 0x139   : > { %766 = dma.done.wait (%p674_p3), %s586_s7, 512  }
 0x13a   : > { %768 = vsyncadd (%p674_p3), %s586_s7, 4294966784  ;;  %p13_p4 = scmp.ge.s32.totalorder %s834_s18, 4   ;;  %s1056_s12 = smov %s775_s13 }
 0x13b   : > { %s1057_s13 = smov %s779_s14  ;;  %s1058_s14 = smov %s847_s21 }
 0x13c   : > { %s1059_s15 = smov %s834_s18  ;;  %15 = sbr.rel (!%p13_p4) target bundleno = 3 (0x3), region = 97 }
 0x141   :  { %591 = vsyncpa [#allocation4], 1 }
 0x142   :  { %593 = vsyncpa [#allocation4 + $0x1], 1 }

</bundles_post_ra>
